<compile_context>
chip_gen: v7x
topology: tpu7x:2x2x1
jax: 0.10.0
libtpu: 0.0.40
codegen_flags: <defaults>
</compile_context>

<pallas_src>
import functools

import jax
import jax.numpy as jnp
from jax.experimental import pallas as pl
from jax.experimental.pallas import tpu as pltpu

BN_EPS = 1e-5
LANE = 128          # feature dims padded to lane multiples (lane-dense MXU/N)
BATCH_ALIGN = 16    # bf16 packs (16, 128) per vreg -> 16-row batch granularity
_MIB = 1024 * 1024


def _round_up(n, m):
    return ((n + m - 1) // m) * m


def _cdiv(a, b):
    return -(-a // b)


def _pad2d(a, shape, dtype, fill=0.0):
    """Zero/constant-pad `a` into `shape` with `dtype`; no-op if already there."""
    if a.shape == shape and a.dtype == jnp.dtype(dtype):
        return a
    base = jnp.full(shape, fill, dtype) if fill else jnp.zeros(shape, dtype)
    return base.at[: a.shape[0], : a.shape[1]].set(a.astype(dtype))


# --------------------------------------------------------------------------
# Kernels
# --------------------------------------------------------------------------
def _fused_kernel(x_ref, w1_ref, gamma_ref, beta_ref, w2_ref, b2_ref, o_ref,
                  *, n_rows):
    """Whole forward in one VMEM-resident tile (small-problem fast path)."""
    # Z = X @ W1  (bias omitted: BN's mean subtraction cancels it exactly).
    z = jnp.dot(x_ref[...], w1_ref[...], preferred_element_type=jnp.float32)
    inv_n = 1.0 / n_rows
    mean = jnp.sum(z, axis=0, keepdims=True) * inv_n        # pad rows are zero
    row = jax.lax.broadcasted_iota(jnp.int32, z.shape, 0)
    zc = jnp.where(row < n_rows, z - mean, 0.0)             # mask pad rows
    var = jnp.sum(zc * zc, axis=0, keepdims=True) * inv_n   # biased (PyTorch BN)
    inv_std = jax.lax.rsqrt(var + BN_EPS)
    a = jnp.maximum(zc * (gamma_ref[...] * inv_std) + beta_ref[...], 0.0)
    out = jnp.dot(a, w2_ref[...], preferred_element_type=jnp.float32)
    o_ref[...] = (out + b2_ref[...]).astype(o_ref.dtype)


def _stats_kernel(x_ref, w1_ref, z_ref, sum_ref, ssq_ref):
    """Pass 1: Z = X @ W1 (persisted bf16) + per-feature sum / sum-of-squares.

    Grid = (n_split, n_inner): the leading axis is "parallel" (v7x 2 TCs each
    reduce their own partial); the inner axis is the batch-tile reduction.
    No masking / bias: batch-padding rows of X are zero, so they contribute
    exactly zero to the statistics.
    """
    @pl.when(pl.program_id(1) == 0)
    def _():
        sum_ref[...] = jnp.zeros_like(sum_ref)
        ssq_ref[...] = jnp.zeros_like(ssq_ref)

    z = jnp.dot(x_ref[...], w1_ref[...], preferred_element_type=jnp.float32)
    z_ref[...] = z.astype(z_ref.dtype)                      # persist for pass 2
    sum_ref[...] += jnp.sum(z, axis=0, keepdims=True)[None]
    ssq_ref[...] += jnp.sum(z * z, axis=0, keepdims=True)[None]


def _finish_kernel(z_ref, scale_ref, shift_ref, w2_ref, b2_ref, o_ref):
    """Pass 2: BN folded into (scale, shift) ; ReLU ; second Linear."""
    a = jnp.maximum(
        z_ref[...].astype(jnp.float32) * scale_ref[...] + shift_ref[...], 0.0)
    out = jnp.dot(a.astype(w2_ref.dtype), w2_ref[...],
                  preferred_element_type=jnp.float32)
    o_ref[...] = (out + b2_ref[...]).astype(o_ref.dtype)


# --------------------------------------------------------------------------
# Tiling / VMEM budgeting
# --------------------------------------------------------------------------
def _choose_batch_tiling(B, in_p, h0_p, h1_p, block_b, out_bytes):
    """Pick (tb, n_tiles, n_split, footprint) so the per-pass VMEM footprint
    (double-buffered tiles + resident weights, conservatively double-counted)
    stays under a budget that fits every generation (v7x: 64 MiB / core)."""
    budget = 44 * _MIB
    bb = max(BATCH_ALIGN, (block_b // BATCH_ALIGN) * BATCH_ALIGN)
    while True:
        nt = _cdiv(B, bb)
        n_split = 2 if nt >= 2 else 1            # v7x: split pass-1 reduction
        nt = n_split * _cdiv(nt, n_split)        # even tile count per core
        tb = min(bb, _round_up(_cdiv(B, nt), BATCH_ALIGN))
        p1 = (2 * tb * in_p * 2 + 2 * in_p * h0_p * 2
              + 2 * tb * h0_p * 2 + 8 * h0_p * 4)
        p2 = (2 * tb * h0_p * 2 + 2 * h0_p * h1_p * 2
              + 2 * tb * h1_p * out_bytes + 6 * h0_p * 4 + 4 * h1_p * 4)
        footprint = max(p1, p2)
        if footprint <= budget or bb <= BATCH_ALIGN:
            return tb, nt, n_split, footprint
        bb = max(BATCH_ALIGN, ((bb // 2) // BATCH_ALIGN) * BATCH_ALIGN)


# --------------------------------------------------------------------------
# Wrapper
# --------------------------------------------------------------------------
@functools.partial(jax.jit,
                   static_argnames=("block_b", "force_tiled", "out_dtype"))
def mlp_forward(x, w1, b1, gamma, beta, w2, b2, *,
                block_b=512, force_tiled=False, out_dtype=None):
    """Forward of MLP(in_dim, hid_dims, act_fn=ReLU, use_bn=True).

    x: (B, in_dim); w1: (in_dim, H0); w2: (H0, H1); b1/gamma/beta: H0; b2: H1.
    b1 is accepted for interface parity but is mathematically a no-op under
    training-mode BatchNorm (the batch-mean subtraction cancels it).
    """
    del b1
    B, IN = x.shape
    H0 = w1.shape[1]
    H1 = w2.shape[1]
    out_dtype = x.dtype if out_dtype is None else out_dtype
    f32, bf16 = jnp.float32, jnp.bfloat16

    gamma = gamma.reshape(1, H0).astype(f32)
    beta = beta.reshape(1, H0).astype(f32)
    b2 = b2.reshape(1, H1).astype(f32)

    in_p = _round_up(IN, LANE)
    h0_p = _round_up(H0, LANE)
    h1_p = _round_up(H1, LANE)

    # ---------------- Small-problem fast path: single fused kernel ----------
    b_pf = _round_up(B, 8)
    fused_bytes = 4 * (b_pf * in_p + in_p * h0_p + 2 * b_pf * h0_p
                       + h0_p * h1_p + b_pf * h1_p + 4 * h0_p + 2 * h1_p)
    if (not force_tiled) and fused_bytes <= 12 * _MIB:
        x_f = _pad2d(x, (b_pf, in_p), f32)
        w1_f = _pad2d(w1, (in_p, h0_p), f32)
        w2_f = _pad2d(w2, (h0_p, h1_p), f32)
        gamma_f = _pad2d(gamma, (1, h0_p), f32, fill=1.0)
        beta_f = _pad2d(beta, (1, h0_p), f32)
        b2_f = _pad2d(b2, (1, h1_p), f32)

        cost = pl.CostEstimate(
            flops=2 * b_pf * in_p * h0_p + 2 * b_pf * h0_p * h1_p + 8 * b_pf * h0_p,
            transcendentals=h0_p,
            bytes_accessed=4 * (x_f.size + w1_f.size + w2_f.size + 4 * h0_p
                                + h1_p + b_pf * h1_p))
        full = lambda shape: pl.BlockSpec(shape, lambda i: (0, 0))
        out_p = pl.pallas_call(
            functools.partial(_fused_kernel, n_rows=B),
            out_shape=jax.ShapeDtypeStruct((b_pf, h1_p), out_dtype),
            grid=(1,),
            in_specs=[full((b_pf, in_p)), full((in_p, h0_p)),
                      full((1, h0_p)), full((1, h0_p)),
                      full((h0_p, h1_p)), full((1, h1_p))],
            out_specs=full((b_pf, h1_p)),
            compiler_params=pltpu.CompilerParams(
                dimension_semantics=("arbitrary",),
                vmem_limit_bytes=int(min(56 * _MIB,
                                         max(32 * _MIB, 2 * fused_bytes)))),
            cost_estimate=cost,
        )(x_f, w1_f, gamma_f, beta_f, w2_f, b2_f)
        if b_pf == B and h1_p == H1:
            return out_p
        return out_p[:B, :H1]

    # ---------------- Tiled two-pass path ------------------------------------
    out_bytes = jnp.dtype(out_dtype).itemsize
    tb, nt, n_split, footprint = _choose_batch_tiling(
        B, in_p, h0_p, h1_p, block_b, out_bytes)
    n_inner = nt // n_split
    b_p = nt * tb
    # NOTE: on v5e/v6e (128 MiB physical VMEM) this could be raised to ~100 MiB
    # for very large weights; 56 MiB keeps v7x (64 MiB/core) safe.
    vmem_limit = int(min(56 * _MIB, max(32 * _MIB, 2 * footprint)))

    # Feature-pad to lane multiples; batch-pad with zero rows (zero rows add
    # nothing to the BN statistics, so no in-kernel masking is needed).
    # _pad2d is a no-op when shape and dtype already match (skips the wrapper
    # HBM pass for pre-padded bf16 inputs).
    x_p = _pad2d(x, (b_p, in_p), bf16)
    w1_p = _pad2d(w1, (in_p, h0_p), bf16)
    w2_p = _pad2d(w2, (h0_p, h1_p), bf16)
    gamma_p = _pad2d(gamma, (1, h0_p), f32, fill=1.0)
    beta_p = _pad2d(beta, (1, h0_p), f32)
    b2_p = _pad2d(b2, (1, h1_p), f32)

    const2 = lambda shape: pl.BlockSpec(shape, lambda c, i: (0, 0))
    const1 = lambda shape: pl.BlockSpec(shape, lambda i: (0, 0))

    # -------- Pass 1: Z (persisted, bf16) + per-feature sum / sum-of-squares.
    stats_cost = pl.CostEstimate(
        flops=2 * b_p * in_p * h0_p + 4 * b_p * h0_p,
        transcendentals=0,
        bytes_accessed=(x_p.size * 2 + w1_p.size * 2 + b_p * h0_p * 2
                        + 2 * n_split * h0_p * 4))
    z_bf, z_sum, z_ssq = pl.pallas_call(
        _stats_kernel,
        out_shape=(jax.ShapeDtypeStruct((b_p, h0_p), bf16),
                   jax.ShapeDtypeStruct((n_split, 1, h0_p), f32),
                   jax.ShapeDtypeStruct((n_split, 1, h0_p), f32)),
        grid=(n_split, n_inner),
        in_specs=[pl.BlockSpec((tb, in_p), lambda c, i: (c * n_inner + i, 0)),
                  const2((in_p, h0_p))],
        out_specs=(pl.BlockSpec((tb, h0_p), lambda c, i: (c * n_inner + i, 0)),
                   pl.BlockSpec((1, 1, h0_p), lambda c, i: (c, 0, 0)),
                   pl.BlockSpec((1, 1, h0_p), lambda c, i: (c, 0, 0))),
        compiler_params=pltpu.CompilerParams(
            dimension_semantics=("parallel", "arbitrary"),
            vmem_limit_bytes=vmem_limit),
        cost_estimate=stats_cost,
    )(x_p, w1_p)

    # Combine per-core partials; fold BN (biased variance, PyTorch training
    # semantics) into a per-feature (scale, shift).
    mean = jnp.sum(z_sum, axis=0) / B                         # (1, h0_p)
    var = jnp.maximum(jnp.sum(z_ssq, axis=0) / B - mean * mean, 0.0)
    inv_std = jax.lax.rsqrt(var + BN_EPS)
    scale = gamma_p * inv_std
    shift = beta_p - mean * scale

    # -------- Pass 2: normalize + ReLU + second Linear (consumes persisted Z).
    mlp_cost = pl.CostEstimate(
        flops=2 * b_p * h0_p * h1_p + 4 * b_p * h0_p,
        transcendentals=0,
        bytes_accessed=(b_p * h0_p * 2 + w2_p.size * 2
                        + (2 * h0_p + h1_p) * 4 + b_p * h1_p * out_bytes))
    out_p = pl.pallas_call(
        _finish_kernel,
        out_shape=jax.ShapeDtypeStruct((b_p, h1_p), out_dtype),
        grid=(nt,),
        in_specs=[pl.BlockSpec((tb, h0_p), lambda i: (i, 0)),
                  const1((1, h0_p)),
                  const1((1, h0_p)),
                  const1((h0_p, h1_p)),
                  const1((1, h1_p))],
        out_specs=pl.BlockSpec((tb, h1_p), lambda i: (i, 0)),
        compiler_params=pltpu.CompilerParams(
            dimension_semantics=("parallel",),
            vmem_limit_bytes=vmem_limit),
        cost_estimate=mlp_cost,
    )(z_bf, scale, shift, w2_p, b2_p)

    if b_p == B and h1_p == H1:
        return out_p
    return out_p[:B, :H1]


# --------------------------------------------------------------------------
# Reference + self-test
# --------------------------------------------------------------------------
def _reference(x, w1, b1, gamma, beta, w2, b2):
    z = x @ w1 + b1
    mean = jnp.mean(z, axis=0, keepdims=True)
    var = jnp.mean((z - mean) ** 2, axis=0, keepdims=True)   # biased (PyTorch BN)
    z = (z - mean) / jnp.sqrt(var + BN_EPS) * gamma + beta
    z = jnp.maximum(z, 0.0)
    return z @ w2 + b2


if __name__ == "__main__":
    IN_DIM, HID = 16, [32, 8]
    key = jax.random.PRNGKey(0)
    k = jax.random.split(key, 8)

    w1 = 0.1 * jax.random.normal(k[1], (IN_DIM, HID[0]), dtype=jnp.float32)
    b1 = 0.1 * jax.random.normal(k[2], (1, HID[0]), dtype=jnp.float32)
    gamma = 1.0 + 0.05 * jax.random.normal(k[3], (1, HID[0]), dtype=jnp.float32)
    beta = 0.05 * jax.random.normal(k[4], (1, HID[0]), dtype=jnp.float32)
    w2 = 0.1 * jax.random.normal(k[5], (HID[0], HID[-1]), dtype=jnp.float32)
    b2 = 0.1 * jax.random.normal(k[6], (1, HID[-1]), dtype=jnp.float32)

    # 1) Small batch (20) -> fused single-kernel fast path.
    x_small = jax.random.normal(k[0], (20, IN_DIM), dtype=jnp.float32)
    out_fused = jax.block_until_ready(
        mlp_forward(x_small, w1, b1, gamma, beta, w2, b2))
    ref_small = _reference(x_small, w1, b1, gamma, beta, w2, b2)
    assert out_fused.shape == (20, HID[-1])
    assert jnp.allclose(out_fused, ref_small, atol=5e-2, rtol=5e-2), \
        "fused path mismatch vs reference"

    # 2) Larger batch, forced tiled path with a small batch tile so it
    #    exercises the 2-way "parallel" split, the inner-axis accumulation,
    #    and the persisted-Z pass 2.
    x_big = jax.random.normal(k[7], (64, IN_DIM), dtype=jnp.float32)
    out_tiled = jax.block_until_ready(
        mlp_forward(x_big, w1, b1, gamma, beta, w2, b2,
                    block_b=16, force_tiled=True))
    ref_big = _reference(x_big, w1, b1, gamma, beta, w2, b2)
    assert out_tiled.shape == (64, HID[-1])
    assert jnp.allclose(out_tiled, ref_big, atol=5e-2, rtol=5e-2), \
        "tiled path mismatch vs reference"

    print("KERNEL_OK")
</pallas_src>

<mosaic_0001>
module attributes {stable_mosaic.version = 11 : i64} {
  func.func @_fused_kernel(%arg0: i32, %arg1: memref<24x128xf32, #tpu.memory_space<vmem>>, %arg2: memref<128x128xf32, #tpu.memory_space<vmem>>, %arg3: memref<1x128xf32, #tpu.memory_space<vmem>>, %arg4: memref<1x128xf32, #tpu.memory_space<vmem>>, %arg5: memref<128x128xf32, #tpu.memory_space<vmem>>, %arg6: memref<1x128xf32, #tpu.memory_space<vmem>>, %arg7: memref<24x128xf32, #tpu.memory_space<vmem>>) attributes {dimension_semantics = [#tpu.dimension_semantics<arbitrary>], iteration_bounds = array<i64: 1>, scalar_prefetch = 0 : i64, scratch_operands = 0 : i64, tpu.core_type = #tpu.core_type<tc>, window_params = [{pipeline_mode = #tpu.pipeline_mode<synchronous>, transform_indices = @transform_0, window_bounds = array<i64: 24, 128>}, {pipeline_mode = #tpu.pipeline_mode<synchronous>, transform_indices = @transform_1, window_bounds = array<i64: 128, 128>}, {pipeline_mode = #tpu.pipeline_mode<synchronous>, transform_indices = @transform_2, window_bounds = array<i64: 1, 128>}, {pipeline_mode = #tpu.pipeline_mode<synchronous>, transform_indices = @transform_3, window_bounds = array<i64: 1, 128>}, {pipeline_mode = #tpu.pipeline_mode<synchronous>, transform_indices = @transform_4, window_bounds = array<i64: 128, 128>}, {pipeline_mode = #tpu.pipeline_mode<synchronous>, transform_indices = @transform_5, window_bounds = array<i64: 1, 128>}, {pipeline_mode = #tpu.pipeline_mode<synchronous>, transform_indices = @transform_6, window_bounds = array<i64: 24, 128>}]} {
    %c0 = arith.constant 0 : index
    %c0_0 = arith.constant 0 : index
    %0 = vector.load %arg1[%c0, %c0_0] : memref<24x128xf32, #tpu.memory_space<vmem>>, vector<24x128xf32>
    %c0_1 = arith.constant 0 : index
    %c0_2 = arith.constant 0 : index
    %1 = vector.load %arg2[%c0_1, %c0_2] : memref<128x128xf32, #tpu.memory_space<vmem>>, vector<128x128xf32>
    %cst = arith.constant dense<0.000000e+00> : vector<24x128xf32>
    %2 = tpu.matmul %0, %1, %cst {dimension_numbers = #tpu.dot_dimension_numbers<[1], [0], [0], [1], [0, 0, 1, 1], [], []>} : vector<24x128xf32>, vector<128x128xf32>, vector<24x128xf32> -> vector<24x128xf32>
    %cst_3 = arith.constant dense<0.000000e+00> : vector<128xf32>
    %3 = vector.multi_reduction <add>, %2, %cst_3 [0] : vector<24x128xf32> to vector<128xf32>
    %4 = vector.shape_cast %3 : vector<128xf32> to vector<1x128xf32>
    %cst_4 = arith.constant 5.000000e-02 : f32
    %5 = vector.broadcast %cst_4 : f32 to vector<1x128xf32>
    %6 = arith.mulf %4, %5 : vector<1x128xf32>
    %7 = tpu.iota {dimensions = array<i32: 0>} : vector<24x128xi32>
    %c20_i32 = arith.constant 20 : i32
    %8 = vector.broadcast %c20_i32 : i32 to vector<24x128xi32>
    %9 = arith.cmpi slt, %7, %8 : vector<24x128xi32>
    %10 = vector.broadcast %6 : vector<1x128xf32> to vector<24x128xf32>
    %11 = arith.subf %2, %10 : vector<24x128xf32>
    %cst_5 = arith.constant 0.000000e+00 : f32
    %12 = vector.broadcast %cst_5 : f32 to vector<24x128xf32>
    %13 = arith.select %9, %11, %12 : vector<24x128xi1>, vector<24x128xf32>
    %14 = arith.mulf %13, %13 : vector<24x128xf32>
    %cst_6 = arith.constant dense<0.000000e+00> : vector<128xf32>
    %15 = vector.multi_reduction <add>, %14, %cst_6 [0] : vector<24x128xf32> to vector<128xf32>
    %16 = vector.shape_cast %15 : vector<128xf32> to vector<1x128xf32>
    %cst_7 = arith.constant 5.000000e-02 : f32
    %17 = vector.broadcast %cst_7 : f32 to vector<1x128xf32>
    %18 = arith.mulf %16, %17 : vector<1x128xf32>
    %cst_8 = arith.constant 9.99999974E-6 : f32
    %19 = vector.broadcast %cst_8 : f32 to vector<1x128xf32>
    %20 = arith.addf %18, %19 : vector<1x128xf32>
    %21 = math.rsqrt %20 : vector<1x128xf32>
    %c0_9 = arith.constant 0 : index
    %c0_10 = arith.constant 0 : index
    %22 = vector.load %arg3[%c0_9, %c0_10] : memref<1x128xf32, #tpu.memory_space<vmem>>, vector<1x128xf32>
    %23 = arith.mulf %22, %21 : vector<1x128xf32>
    %24 = vector.broadcast %23 : vector<1x128xf32> to vector<24x128xf32>
    %25 = arith.mulf %13, %24 : vector<24x128xf32>
    %c0_11 = arith.constant 0 : index
    %c0_12 = arith.constant 0 : index
    %26 = vector.load %arg4[%c0_11, %c0_12] : memref<1x128xf32, #tpu.memory_space<vmem>>, vector<1x128xf32>
    %27 = vector.broadcast %26 : vector<1x128xf32> to vector<24x128xf32>
    %28 = arith.addf %25, %27 : vector<24x128xf32>
    %cst_13 = arith.constant 0.000000e+00 : f32
    %29 = vector.broadcast %cst_13 : f32 to vector<24x128xf32>
    %30 = arith.maximumf %28, %29 : vector<24x128xf32>
    %c0_14 = arith.constant 0 : index
    %c0_15 = arith.constant 0 : index
    %31 = vector.load %arg5[%c0_14, %c0_15] : memref<128x128xf32, #tpu.memory_space<vmem>>, vector<128x128xf32>
    %cst_16 = arith.constant dense<0.000000e+00> : vector<24x128xf32>
    %32 = tpu.matmul %30, %31, %cst_16 {dimension_numbers = #tpu.dot_dimension_numbers<[1], [0], [0], [1], [0, 0, 1, 1], [], []>} : vector<24x128xf32>, vector<128x128xf32>, vector<24x128xf32> -> vector<24x128xf32>
    %c0_17 = arith.constant 0 : index
    %c0_18 = arith.constant 0 : index
    %33 = vector.load %arg6[%c0_17, %c0_18] : memref<1x128xf32, #tpu.memory_space<vmem>>, vector<1x128xf32>
    %34 = vector.broadcast %33 : vector<1x128xf32> to vector<24x128xf32>
    %35 = arith.addf %32, %34 : vector<24x128xf32>
    %c0_19 = arith.constant 0 : index
    %c0_20 = arith.constant 0 : index
    %36 = vector.load %arg7[%c0_19, %c0_20] : memref<24x128xf32, #tpu.memory_space<vmem>>, vector<24x128xf32>
    tpu.vector_store %arg7[%c0_19, %c0_20], %35 {strides = array<i32>} : memref<24x128xf32, #tpu.memory_space<vmem>>, vector<24x128xf32>,
    return
  }
  func.func @transform_0(%arg0: i32) -> (i32, i32) {
    %c0_i32 = arith.constant 0 : i32
    %c0_i32_0 = arith.constant 0 : i32
    %c0_i32_1 = arith.constant 0 : i32
    return %c0_i32, %c0_i32_0 : i32, i32
  }
  func.func @transform_1(%arg0: i32) -> (i32, i32) {
    %c0_i32 = arith.constant 0 : i32
    %c0_i32_0 = arith.constant 0 : i32
    %c0_i32_1 = arith.constant 0 : i32
    return %c0_i32, %c0_i32_0 : i32, i32
  }
  func.func @transform_2(%arg0: i32) -> (i32, i32) {
    %c0_i32 = arith.constant 0 : i32
    %c0_i32_0 = arith.constant 0 : i32
    %c0_i32_1 = arith.constant 0 : i32
    return %c0_i32, %c0_i32_0 : i32, i32
  }
  func.func @transform_3(%arg0: i32) -> (i32, i32) {
    %c0_i32 = arith.constant 0 : i32
    %c0_i32_0 = arith.constant 0 : i32
    %c0_i32_1 = arith.constant 0 : i32
    return %c0_i32, %c0_i32_0 : i32, i32
  }
  func.func @transform_4(%arg0: i32) -> (i32, i32) {
    %c0_i32 = arith.constant 0 : i32
    %c0_i32_0 = arith.constant 0 : i32
    %c0_i32_1 = arith.constant 0 : i32
    return %c0_i32, %c0_i32_0 : i32, i32
  }
  func.func @transform_5(%arg0: i32) -> (i32, i32) {
    %c0_i32 = arith.constant 0 : i32
    %c0_i32_0 = arith.constant 0 : i32
    %c0_i32_1 = arith.constant 0 : i32
    return %c0_i32, %c0_i32_0 : i32, i32
  }
  func.func @transform_6(%arg0: i32) -> (i32, i32) {
    %c0_i32 = arith.constant 0 : i32
    %c0_i32_0 = arith.constant 0 : i32
    %c0_i32_1 = arith.constant 0 : i32
    return %c0_i32, %c0_i32_0 : i32, i32
  }
}

</mosaic_0001>

<bundles_post_ra>
// kernel: mlp_forward.1
= control target key start
LH: loop header
LB: loop body
LE: loop exit
PB: predicated region body
PF: predicated region fallthrough
CT: control target
= control target key end

     0   :  { %v467_v0 = vmov 0.0|0.0   ;;  %vm468_vm0 = vmmov 0   ;;  %v469_v4 = vmov 0.0   ;;  %v131_v62 = vlaneseq  ;;  %s656_s1 = inlined_call_operand.vmem [shape: f32[128,128], index: 1, kind: input, shape index: {}]   ;;  %s657_s0 = inlined_call_operand.vmem [shape: f32[24,128], index: 0, kind: input, shape index: {}]   ;;  %s658_s4 = inlined_call_operand.vmem [shape: f32[128,128], index: 4, kind: input, shape index: {}]   ;;  %s659_s2 = inlined_call_operand.vmem [shape: f32[1,128], index: 2, kind: input, shape index: {}]   ;;  %s660_s3 = inlined_call_operand.vmem [shape: f32[1,128], index: 3, kind: input, shape index: {}]   ;;  %s661_s5 = inlined_call_operand.vmem [shape: f32[1,128], index: 5, kind: input, shape index: {}]   ;;  %s662_s6 = inlined_call_operand.vmem [shape: f32[24,128], index: 6, kind: output, shape index: {}]  }
   0x1   :  { %414 = vmatprep.subr.bf16.mxu0 %v467_v0  ;;  %v26_v1 = vld [vmem:[%s656_s1] sm:$0xff]  ;;  %v27_v2 = vld [vmem:[%s656_s1 + $0x8] sm:$0xff]  ;;  %v28_v3 = vld [vmem:[%s656_s1 + $0x10] sm:$0xff]  ;;  %364 = vmatprep.mubr.msk.f32.mxu0 %vm468_vm0, %v469_v4 }
   0x2   :  { %v415_v5 = vpack.c.bf16 %v27_v2, %v26_v1  ;;  %v29_v6 = vld [vmem:[%s656_s1 + $0x18] sm:$0xff]  ;;  %438 = vmatprep.subr.bf16.mxu1 %v467_v0  ;;  %405 = vmatprep.mubr.msk.f32.mxu1 %vm468_vm0, %v469_v4  ;;  %v30_v8 = vld [vmem:[%s656_s1 + $0x20] sm:$0xff]  ;;  %v31_v9 = vld [vmem:[%s656_s1 + $0x28] sm:$0xff]  ;;  %v132_v1 = vshrl.u32 %v131_v62, 7 }
   0x3   :  { %v418_v7 = vpack.c.bf16 %v29_v6, %v28_v3  ;;  %v421_v10 = vpack.c.bf16 %v31_v9, %v30_v8  ;;  %v32_v11 = vld [vmem:[%s656_s1 + $0x30] sm:$0xff]  ;;  %v33_v12 = vld [vmem:[%s656_s1 + $0x38] sm:$0xff]  ;;  %v34_v14 = vld [vmem:[%s656_s1 + $0x40] sm:$0xff] }
   0x4   :  { %416 = vmatpush3.bf16.msra.mxu0 %v415_v5  ;;  %v424_v13 = vpack.c.bf16 %v33_v12, %v32_v11  ;;  %v35_v15 = vld [vmem:[%s656_s1 + $0x48] sm:$0xff]  ;;  %v36_v17 = vld [vmem:[%s656_s1 + $0x50] sm:$0xff]  ;;  %v37_v18 = vld [vmem:[%s656_s1 + $0x58] sm:$0xff]  ;;  %v134_v5 = vadd.s32 16, %v132_v1 }
   0x5   :  { %417 = vmatprep.subr.bf16.mxu0 %v467_v0  ;;  %v427_v16 = vpack.c.bf16 %v35_v15, %v34_v14  ;;  %v430_v19 = vpack.c.bf16 %v37_v18, %v36_v17  ;;  %v38_v20 = vld [vmem:[%s656_s1 + $0x60] sm:$0xff]  ;;  %v39_v21 = vld [vmem:[%s656_s1 + $0x68] sm:$0xff]  ;;  %v40_v23 = vld [vmem:[%s656_s1 + $0x70] sm:$0xff] }
   0x6   :  { %v433_v22 = vpack.c.bf16 %v39_v21, %v38_v20  ;;  %v41_v24 = vld [vmem:[%s656_s1 + $0x78] sm:$0xff]  ;;  %v23_v26 = vld [vmem:[%s657_s0] sm:$0xff]  ;;  %v24_v27 = vld [vmem:[%s657_s0 + $0x8] sm:$0xff]  ;;  %vm137_vm1 = vcmp.lt.s32.totalorder %v134_v5, 20 }
   0x7   :  { %v436_v25 = vpack.c.bf16 %v41_v24, %v40_v23  ;;  %v25_v28 = vld [vmem:[%s657_s0 + $0x10] sm:$0xff]  ;;  %v182_v29 = vld [vmem:[%s658_s4] sm:$0xff]  ;;  %v183_v30 = vld [vmem:[%s658_s4 + $0x8] sm:$0xff] }
   0x8   :  { %419 = vmatpush3.bf16.msra.mxu0 %v418_v7  ;;  %v439_v31 = vpack.c.bf16 %v183_v30, %v182_v29  ;;  %v184_v32 = vld [vmem:[%s658_s4 + $0x10] sm:$0xff]  ;;  %v185_v33 = vld [vmem:[%s658_s4 + $0x18] sm:$0xff]  ;;  %v186_v35 = vld [vmem:[%s658_s4 + $0x20] sm:$0xff] }
   0x9   :  { %420 = vmatprep.subr.bf16.mxu0 %v467_v0  ;;  %v442_v34 = vpack.c.bf16 %v185_v33, %v184_v32  ;;  %v187_v36 = vld [vmem:[%s658_s4 + $0x28] sm:$0xff]  ;;  %v188_v38 = vld [vmem:[%s658_s4 + $0x30] sm:$0xff]  ;;  %v189_v39 = vld [vmem:[%s658_s4 + $0x38] sm:$0xff] }
   0xa   :  { %440 = vmatpush3.bf16.msra.mxu1 %v439_v31  ;;  %v445_v37 = vpack.c.bf16 %v187_v36, %v186_v35  ;;  %v448_v40 = vpack.c.bf16 %v189_v39, %v188_v38  ;;  %v190_v41 = vld [vmem:[%s658_s4 + $0x40] sm:$0xff]  ;;  %v191_v42 = vld [vmem:[%s658_s4 + $0x48] sm:$0xff]  ;;  %v192_v44 = vld [vmem:[%s658_s4 + $0x50] sm:$0xff] }
   0xb   :  { %441 = vmatprep.subr.bf16.mxu1 %v467_v0  ;;  %v451_v43 = vpack.c.bf16 %v191_v42, %v190_v41  ;;  %v193_v45 = vld [vmem:[%s658_s4 + $0x58] sm:$0xff]  ;;  %v194_v47 = vld [vmem:[%s658_s4 + $0x60] sm:$0xff]  ;;  %v195_v48 = vld [vmem:[%s658_s4 + $0x68] sm:$0xff] }
   0xc   :  { %422 = vmatpush3.bf16.msra.mxu0 %v421_v10  ;;  %v454_v46 = vpack.c.bf16 %v193_v45, %v192_v44  ;;  %v457_v49 = vpack.c.bf16 %v195_v48, %v194_v47  ;;  %v196_v50 = vld [vmem:[%s658_s4 + $0x70] sm:$0xff]  ;;  %v197_v51 = vld [vmem:[%s658_s4 + $0x78] sm:$0xff]  ;;  %v292_v30 = vld [vmem:[%s660_s3] ss:$0 sm:$0xff] }
   0xd   :  { %423 = vmatprep.subr.bf16.mxu0 %v467_v0  ;;  %v460_v52 = vpack.c.bf16 %v197_v51, %v196_v50 }
   0xe   :  { %443 = vmatpush3.bf16.msra.mxu1 %v442_v34 }
   0xf   :  { %444 = vmatprep.subr.bf16.mxu1 %v467_v0 }
  0x10   :  { %425 = vmatpush3.bf16.msra.mxu0 %v424_v13 }
  0x11   :  { %426 = vmatprep.subr.bf16.mxu0 %v467_v0 }
  0x12   :  { %446 = vmatpush3.bf16.msra.mxu1 %v445_v37 }
  0x13   :  { %447 = vmatprep.subr.bf16.mxu1 %v467_v0 }
  0x14   :  { %428 = vmatpush3.bf16.msra.mxu0 %v427_v16 }
  0x15   :  { %429 = vmatprep.subr.bf16.mxu0 %v467_v0 }
  0x16   :  { %449 = vmatpush3.bf16.msra.mxu1 %v448_v40  ;;  %v293_v40 = vld [vmem:[%s661_s5] ss:$0 sm:$0xff] }
  0x17   :  { %450 = vmatprep.subr.bf16.mxu1 %v467_v0 }
  0x18   :  { %431 = vmatpush3.bf16.msra.mxu0 %v430_v19 }
  0x19   :  { %432 = vmatprep.subr.bf16.mxu0 %v467_v0 }
  0x1a   :  { %452 = vmatpush3.bf16.msra.mxu1 %v451_v43 }
  0x1b   :  { %453 = vmatprep.subr.bf16.mxu1 %v467_v0 }
  0x1c   :  { %434 = vmatpush3.bf16.msra.mxu0 %v433_v22 }
  0x1d   :  { %435 = vmatprep.subr.bf16.mxu0 %v467_v0 }
  0x1e   :  { %455 = vmatpush3.bf16.msra.mxu1 %v454_v46 }
  0x1f   :  { %456 = vmatprep.subr.bf16.mxu1 %v467_v0 }
  0x20   :  { %437 = vmatpush3.bf16.msra.mxu0 %v436_v25  ;;  %v158_v25 = vld [vmem:[%s659_s2] sm:$0x1] }
  0x22   :  { %458 = vmatpush3.bf16.msra.mxu1 %v457_v49 }
  0x23   :  { %365 = vmatmul.mubr.f32.vlgmr.msra.gmra.mrb[0].mxu0 %v23_v26  ;;  %459 = vmatprep.subr.bf16.mxu1 %v467_v0  ;;  %v163_v26 = vsub.s32 0, %v132_v1 }
  0x24   :  { %367 = vmatprep.mubr.msk.f32.mxu0 %vm468_vm0, %v469_v4 }
  0x26   :  { %461 = vmatpush3.bf16.msra.mxu1 %v460_v52 }
  0x27   :  { %368 = vmatmul.mubr.f32.gmra.mrb[2].mxu0 %v24_v27 }
  0x28   :  { %370 = vmatprep.mubr.msk.f32.mxu0 %vm468_vm0, %v469_v4 }
  0x2b   :  { %371 = vmatmul.mubr.f32.gmra.mrb[4].mxu0 %v25_v28 }
  0xf6   :  { %v108_v53 = vpop.f32.mrb[0].mxu0 }
  0xf7   :  { %v366_v54 = vpop.f32.mrb[1].mxu0 }
  0xfa   :  { %v113_v55 = vpop.f32.mrb[2].mxu0 }
  0xfb   :  { %v122_v56 = vadd.f32 %v113_v55, %v108_v53  ;;  %v369_v57 = vpop.f32.mrb[3].mxu0 }
  0xfe   :  { %v118_v58 = vpop.f32.mrb[4].mxu0 }
  0xff   :  { %v123_v59 = vadd.f32 %v122_v56, %v118_v58  ;;  %v372_v60 = vpop.f32.mrb[5].mxu0 }
 0x101   :  { %v124_v61 = vrot.slane %v123_v59, 4 }
 0x103   :  { %v125_v63 = vadd.f32 %v124_v61, %v123_v59 }
 0x105   :  { %v126_v0 = vrot.slane %v125_v63, 2 }
 0x107   :  { %v127_v2 = vadd.f32 %v126_v0, %v125_v63 }
 0x109   :  { %v128_v3 = vrot.slane %v127_v2, 1 }
 0x10b   :  { %v129_v6 = vadd.f32 %v128_v3, %v127_v2 }
 0x10d   :  { %v130_v7 = vmul.f32 0.05, %v129_v6 }
 0x10f   :  { %v138_v8 = vsub.f32 %v108_v53, %v130_v7  ;;  %v139_v9 = vsub.f32 %v113_v55, %v130_v7  ;;  %v140_v10 = vsub.f32 %v118_v58, %v130_v7 }
 0x111   :  { %v143_v11 = vsel %vm137_vm1, %v140_v10, 0.0  ;;  %v144_v12 = vmul.f32 %v138_v8, %v138_v8  ;;  %v145_v13 = vmul.f32 %v139_v9, %v139_v9 }
 0x112   :  { %v146_v14 = vmul.f32 %v143_v11, %v143_v11 }
 0x113   :  { %v147_v15 = vadd.f32 %v145_v13, %v144_v12 }
 0x115   :  { %v148_v16 = vadd.f32 %v147_v15, %v146_v14 }
 0x117   :  { %v149_v17 = vrot.slane %v148_v16, 4 }
 0x119   :  { %v150_v18 = vadd.f32 %v149_v17, %v148_v16 }
 0x11b   :  { %v151_v19 = vrot.slane %v150_v18, 2 }
 0x11d   :  { %v152_v20 = vadd.f32 %v151_v19, %v150_v18 }
 0x11f   :  { %v153_v21 = vrot.slane %v152_v20, 1 }
 0x121   :  { %v154_v22 = vadd.f32 %v153_v21, %v152_v20 }
 0x123   :  { %v155_v23 = vmul.f32 0.05, %v154_v22 }
 0x125   :  { %v156_v24 = vadd.f32 1e-05, %v155_v23 }
 0x127   :  { %465 = vrsqrt.f32 %v156_v24 }
 0x131   :  { %v466_v27 = vpop.eup %465 }
 0x132   :  { %v159_v28 = vmul.f32 %v466_v27, %v158_v25 }
 0x134   :  { %v164_v29 = vrot.slane %v159_v28, %v163_v26 }
 0x136   :  { %v168_v31 = vmul.f32 %v164_v29, %v143_v11  ;;  %v166_v32 = vmul.f32 %v164_v29, %v138_v8  ;;  %v167_v33 = vmul.f32 %v164_v29, %v139_v9 }
 0x138   :  { %v176_v34 = vadd.f32 %v292_v30, %v166_v32  ;;  %v177_v36 = vadd.f32 %v292_v30, %v167_v33  ;;  %v178_v38 = vadd.f32 %v292_v30, %v168_v31 }
 0x13a   :  { %v179_v35 = vmax.f32 %v176_v34, 0.0  ;;  %v180_v37 = vmax.f32 %v177_v36, 0.0  ;;  %v181_v39 = vmax.f32 %v178_v38, 0.0 }
 0x13c   :  { %406 = vmatmul.mubr.f32.vlgmr.msra.gmra.mrb[0].mxu1 %v179_v35 }
 0x13d   :  { %408 = vmatprep.mubr.msk.f32.mxu1 %vm468_vm0, %v469_v4 }
 0x140   :  { %409 = vmatmul.mubr.f32.gmra.mrb[2].mxu1 %v180_v37 }
 0x141   :  { %411 = vmatprep.mubr.msk.f32.mxu1 %vm468_vm0, %v469_v4 }
 0x144   :  { %412 = vmatmul.mubr.f32.gmra.mrb[4].mxu1 %v181_v39 }
 0x20f   :  { %v271_v41 = vpop.f32.mrb[0].mxu1 }
 0x210   :  { %v272_v42 = vadd.f32 %v293_v40, %v271_v41  ;;  %v407_v43 = vpop.f32.mrb[1].mxu1 }
 0x212   :  { %285 = vst [vmem:[%s662_s6] sm:$0xff] %v272_v42 }
 0x213   :  { %v276_v44 = vpop.f32.mrb[2].mxu1 }
 0x214   :  { %v277_v45 = vadd.f32 %v293_v40, %v276_v44  ;;  %v410_v46 = vpop.f32.mrb[3].mxu1 }
 0x216   :  { %286 = vst [vmem:[%s662_s6 + $0x8] sm:$0xff] %v277_v45 }
 0x217   :  { %v281_v4 = vpop.f32.mrb[4].mxu1 }
 0x218   :  { %v282_v47 = vadd.f32 %v293_v40, %v281_v4  ;;  %v413_v48 = vpop.f32.mrb[5].mxu1 }
 0x21a   :  { %287 = vst [vmem:[%s662_s6 + $0x10] sm:$0xff] %v282_v47 }

</bundles_post_ra>
